<compile_context>
chip_gen: v6e
topology: v6e:2x2x1
jax: 0.10.0
libtpu: 0.0.40
codegen_flags: <defaults>
</compile_context>

<pallas_src>
import jax
import jax.numpy as jnp
from jax.experimental import pallas as pl
from jax.experimental.pallas import tpu as pltpu

EPS = 1e-5


def _round_up(x, m):
    return (x + m - 1) // m * m


def _choose_p(H, W):
    """Smallest padded row width P >= W+2 such that H*P is a multiple of 128.
    A valid P always exists within [W+2, W+130] -> lane-dense output stores."""
    base = W + 2
    for cand in range(base, base + 129):
        if (H * cand) % 128 == 0:
            return cand
    raise AssertionError("unreachable: a multiple of 128/gcd(H,128) exists in any 128-range")


def resnet_block(x, params):
    """x: (N, C, H, W) float32.  params: w1,b1,w2,b2 (PyTorch Conv2d shapes)."""
    N, C, H, W = x.shape
    P = _choose_p(H, W)                      # padded row width
    M = H * P                                # flat (width-padded) output length, %128==0
    Lp = _round_up((H + 2) * P + 2, 128)     # flat padded-input length (lane-dense)
    Cp = _round_up(C, 16)                    # bf16 sublane tile -> aligned im2col blocks
    A = _round_up(P + 1, 128)                # 128-aligned start of y1 inside its scratch
    Lp2 = _round_up(A + M + P + 1, 128)      # padded-y1 scratch length
    inv_hw = 1.0 / float(H * W)
    offs = tuple(dy * P + dx for dy in range(3) for dx in range(3))

    # --- cheap XLA glue: zero-pad to (H+2, P), flatten, pad tail to Lp -------
    xp = jnp.pad(x.astype(jnp.float32), ((0, 0), (0, 0), (1, 1), (1, P - W - 1)))
    xpf = xp.reshape(N, C, (H + 2) * P)
    xpf = jnp.pad(xpf, ((0, 0), (0, 0), (0, Lp - (H + 2) * P)))

    # --- pack each conv's 9 taps along the contraction dim: (C, 9*Cp) bf16 ---
    def _cat_taps(w):                         # (C,C,3,3) -> (C, 9*Cp), block t = dy*3+dx
        t = jnp.transpose(w, (0, 2, 3, 1))    # (out, ky, kx, in)
        t = jnp.pad(t, ((0, 0), (0, 0), (0, 0), (0, Cp - C)))
        return t.reshape(C, 9 * Cp)

    w_cat = jnp.stack([_cat_taps(params["w1"]), _cat_taps(params["w2"])],
                      axis=0).astype(jnp.bfloat16)           # (2, C, 9*Cp)
    b1 = params["b1"].reshape(C, 1).astype(jnp.float32)

    def kernel(xpf_ref, w_ref, b1_ref, out_ref, y1p_ref, xim_ref):
        # Pad rows of the im2col scratch must be zero (weights there are zero
        # too, but uninitialized VMEM could hold NaN/Inf).  Only needed when C
        # is not a multiple of the 16-row bf16 tile (static python condition).
        if Cp > C:
            xim_ref[...] = jnp.zeros((9 * Cp, M), jnp.bfloat16)

        xf = xpf_ref[0]                               # (C, Lp) f32, padded slab
        xf_bf = xf.astype(jnp.bfloat16)               # single hoisted cast

        # ---- conv1: in-VMEM im2col + ONE (C,9Cp)@(9Cp,M) bf16 MXU matmul ----
        for t, off in enumerate(offs):
            xim_ref[t * Cp:t * Cp + C, :] = xf_bf[:, off:off + M]
        acc1 = jnp.dot(w_ref[0], xim_ref[...],
                       preferred_element_type=jnp.float32)    # (C, M) f32
        y1 = jnp.maximum(acc1 + b1_ref[...], 0.0)             # bias + ReLU

        # lane o is a real pixel iff (o mod P) < W  -- (1, M), broadcast later
        col = jax.lax.broadcasted_iota(jnp.int32, (1, M), 1)
        maskf = ((col % P) < W).astype(jnp.float32)

        # ---- re-zero-pad y1 (bf16) at the 128-aligned offset A --------------
        # Small lane-aligned borders cleared every step (see header NOTE).
        y1p_ref[:, :A] = jnp.zeros((C, A), jnp.bfloat16)
        y1p_ref[:, A + M:] = jnp.zeros((C, Lp2 - A - M), jnp.bfloat16)
        y1p_ref[:, A:A + M] = (y1 * maskf).astype(jnp.bfloat16)

        # ---- conv2: same im2col trick, reading the padded-y1 scratch --------
        base2 = A - (P + 1)
        for t, off in enumerate(offs):
            xim_ref[t * Cp:t * Cp + C, :] = y1p_ref[:, base2 + off:base2 + off + M]
        acc2 = jnp.dot(w_ref[1], xim_ref[...],
                       preferred_element_type=jnp.float32)    # (C, M) f32
        # conv2 bias b2 omitted: a per-channel shift cancels exactly inside
        # the affine-free instance norm that follows.

        # ---- instance norm (one-pass stats over valid lanes) -> per-ch FMA --
        c2m = acc2 * maskf
        s1 = jnp.sum(c2m, axis=-1, keepdims=True)              # sum
        s2 = jnp.sum(c2m * acc2, axis=-1, keepdims=True)       # sum of squares
        mean = s1 * inv_hw
        var = s2 * inv_hw - mean * mean
        a = jax.lax.rsqrt(var + EPS)                           # (C,1) scale
        b = -mean * a                                          # (C,1) shift

        # ---- residual (f32, read from the slab center) + ReLU ---------------
        xres = xf[:, P + 1:P + 1 + M]
        out_ref[0] = jnp.maximum(xres + (acc2 * a + b), 0.0)

    # VMEM budget from the actual buffers (double-buffered I/O + scratch +
    # live temps), capped at 64 MiB for v7x safety.
    est = (2 * C * Lp * 4                   # input slab (x2 pipeline buffers)
           + 2 * 2 * C * 9 * Cp * 2         # packed taps
           + 2 * C * 4                      # bias
           + 2 * C * M * 4                  # output
           + C * Lp2 * 2 + 9 * Cp * M * 2   # scratch
           + 6 * C * M * 4 + C * Lp * 2)    # live f32 temps + bf16 slab copy
    vmem_limit = int(min(max(est * 5 // 4, 32 * 1024 * 1024), 64 * 1024 * 1024))

    out_flat = pl.pallas_call(
        kernel,
        out_shape=jax.ShapeDtypeStruct((N, C, M), jnp.float32),
        grid=(N,),
        in_specs=[
            pl.BlockSpec((1, C, Lp), lambda n: (n, 0, 0)),       # padded activation
            pl.BlockSpec((2, C, 9 * Cp), lambda n: (0, 0, 0)),   # conv1+conv2 taps (resident)
            pl.BlockSpec((C, 1), lambda n: (0, 0)),              # conv1 bias
        ],
        out_specs=pl.BlockSpec((1, C, M), lambda n: (n, 0, 0)),
        scratch_shapes=[
            pltpu.VMEM((C, Lp2), jnp.bfloat16),     # zero-padded y1 (never hits HBM)
            pltpu.VMEM((9 * Cp, M), jnp.bfloat16),  # shared im2col operand (both convs)
        ],
        compiler_params=pltpu.CompilerParams(
            dimension_semantics=("parallel",),       # N=2 -> both TCs busy on v7x
            vmem_limit_bytes=vmem_limit),
    )(xpf, w_cat, b1)

    # strip the junk padding columns (pure XLA slice)
    return out_flat.reshape(N, C, H, P)[:, :, :, :W]


# ---------------------------------------------------------------------------
# deterministic parameter init (PyTorch Conv2d shapes)
# ---------------------------------------------------------------------------
def init_params(key, dim):
    k1, k2, k3, k4 = jax.random.split(key, 4)
    std = 0.1
    return dict(
        w1=jax.random.normal(k1, (dim, dim, 3, 3), jnp.float32) * std,
        b1=jax.random.normal(k2, (dim,), jnp.float32) * std,
        w2=jax.random.normal(k3, (dim, dim, 3, 3), jnp.float32) * std,
        b2=jax.random.normal(k4, (dim,), jnp.float32) * std,
    )


# ---------------------------------------------------------------------------
# pure-JAX reference (same math / same matmul precision) for a sanity check
# ---------------------------------------------------------------------------
def reference_forward(x, params):
    N, C, H, W = x.shape

    def conv3x3(inp, w):
        return jax.lax.conv_general_dilated(
            inp.astype(jnp.bfloat16), w.astype(jnp.bfloat16),
            window_strides=(1, 1), padding=((1, 1), (1, 1)),
            dimension_numbers=("NCHW", "OIHW", "NCHW"),
            preferred_element_type=jnp.float32)

    c1 = conv3x3(x, params["w1"]) + params["b1"].reshape(1, C, 1, 1)
    h = jnp.maximum(c1, 0.0)
    c2 = conv3x3(h, params["w2"]) + params["b2"].reshape(1, C, 1, 1)
    m = c2.mean(axis=(2, 3), keepdims=True)
    v = ((c2 - m) ** 2).mean(axis=(2, 3), keepdims=True)
    n = (c2 - m) * jax.lax.rsqrt(v + EPS)                 # InstanceNorm2d, affine=False
    return jnp.maximum(x + n, 0.0)


if __name__ == "__main__":
    N, C, H, W = 2, 4, 16, 16

    key = jax.random.PRNGKey(0)
    k_x, k_p = jax.random.split(key)
    x = jax.random.normal(k_x, (N, C, H, W), jnp.float32)
    params = init_params(k_p, C)

    out = jax.block_until_ready(jax.jit(resnet_block)(x, params))
    ref = jax.block_until_ready(reference_forward(x, params))

    assert out.shape == (N, C, H, W)
    max_err = float(jnp.max(jnp.abs(out - ref)))
    if max_err > 1e-2:
        raise AssertionError(f"mismatch vs reference: max abs err = {max_err}")
    print("KERNEL_OK")
</pallas_src>

<mosaic_0001>
module attributes {stable_mosaic.version = 11 : i64} {
  func.func @kernel(%arg0: i32, %arg1: memref<1x4x512xf32, #tpu.memory_space<vmem>>, %arg2: memref<2x4x144xbf16, #tpu.memory_space<vmem>>, %arg3: memref<4x1xf32, #tpu.memory_space<vmem>>, %arg4: memref<1x4x384xf32, #tpu.memory_space<vmem>>, %arg5: memref<4x640xbf16, #tpu.memory_space<vmem>>, %arg6: memref<144x384xbf16, #tpu.memory_space<vmem>>) attributes {dimension_semantics = [#tpu.dimension_semantics<parallel>], iteration_bounds = array<i64: 2>, scalar_prefetch = 0 : i64, scratch_operands = 2 : i64, tpu.core_type = #tpu.core_type<tc>, window_params = [{transform_indices = @transform_0, window_bounds = array<i64: 1, 4, 512>}, {pipeline_mode = #tpu.pipeline_mode<synchronous>, transform_indices = @transform_1, window_bounds = array<i64: 2, 4, 144>}, {pipeline_mode = #tpu.pipeline_mode<synchronous>, transform_indices = @transform_2, window_bounds = array<i64: 4, 1>}, {transform_indices = @transform_3, window_bounds = array<i64: 1, 4, 384>}]} {
    %cst = arith.constant 0.000000e+00 : bf16
    %0 = vector.broadcast %cst : bf16 to vector<144x384xbf16>
    %c0 = arith.constant 0 : index
    %c0_0 = arith.constant 0 : index
    %1 = vector.load %arg6[%c0, %c0_0] : memref<144x384xbf16, #tpu.memory_space<vmem>>, vector<144x384xbf16>
    tpu.vector_store %arg6[%c0, %c0_0], %0 {strides = array<i32>} : memref<144x384xbf16, #tpu.memory_space<vmem>>, vector<144x384xbf16>,
    %c0_1 = arith.constant 0 : index
    %c0_2 = arith.constant 0 : index
    %c0_3 = arith.constant 0 : index
    %2 = vector.load %arg1[%c0_1, %c0_2, %c0_3] : memref<1x4x512xf32, #tpu.memory_space<vmem>>, vector<1x4x512xf32>
    %3 = vector.shape_cast %2 : vector<1x4x512xf32> to vector<4x512xf32>
    %4 = arith.truncf %3 : vector<4x512xf32> to vector<4x512xbf16>
    %5 = vector.extract_strided_slice %4 {offsets = [0, 0], sizes = [4, 384], strides = [1, 1]} : vector<4x512xbf16> to vector<4x384xbf16>
    %c0_4 = arith.constant 0 : index
    %c0_5 = arith.constant 0 : index
    %6 = vector.load %arg6[%c0_4, %c0_5] : memref<144x384xbf16, #tpu.memory_space<vmem>>, vector<4x384xbf16>
    tpu.vector_store %arg6[%c0_4, %c0_5], %5 {strides = array<i32>} : memref<144x384xbf16, #tpu.memory_space<vmem>>, vector<4x384xbf16>,
    %7 = vector.extract_strided_slice %4 {offsets = [0, 1], sizes = [4, 384], strides = [1, 1]} : vector<4x512xbf16> to vector<4x384xbf16>
    %c16 = arith.constant 16 : index
    %c0_6 = arith.constant 0 : index
    %8 = vector.load %arg6[%c16, %c0_6] : memref<144x384xbf16, #tpu.memory_space<vmem>>, vector<4x384xbf16>
    tpu.vector_store %arg6[%c16, %c0_6], %7 {strides = array<i32>} : memref<144x384xbf16, #tpu.memory_space<vmem>>, vector<4x384xbf16>,
    %9 = vector.extract_strided_slice %4 {offsets = [0, 2], sizes = [4, 384], strides = [1, 1]} : vector<4x512xbf16> to vector<4x384xbf16>
    %c32 = arith.constant 32 : index
    %c0_7 = arith.constant 0 : index
    %10 = vector.load %arg6[%c32, %c0_7] : memref<144x384xbf16, #tpu.memory_space<vmem>>, vector<4x384xbf16>
    tpu.vector_store %arg6[%c32, %c0_7], %9 {strides = array<i32>} : memref<144x384xbf16, #tpu.memory_space<vmem>>, vector<4x384xbf16>,
    %11 = vector.extract_strided_slice %4 {offsets = [0, 24], sizes = [4, 384], strides = [1, 1]} : vector<4x512xbf16> to vector<4x384xbf16>
    %c48 = arith.constant 48 : index
    %c0_8 = arith.constant 0 : index
    %12 = vector.load %arg6[%c48, %c0_8] : memref<144x384xbf16, #tpu.memory_space<vmem>>, vector<4x384xbf16>
    tpu.vector_store %arg6[%c48, %c0_8], %11 {strides = array<i32>} : memref<144x384xbf16, #tpu.memory_space<vmem>>, vector<4x384xbf16>,
    %13 = vector.extract_strided_slice %4 {offsets = [0, 25], sizes = [4, 384], strides = [1, 1]} : vector<4x512xbf16> to vector<4x384xbf16>
    %c64 = arith.constant 64 : index
    %c0_9 = arith.constant 0 : index
    %14 = vector.load %arg6[%c64, %c0_9] : memref<144x384xbf16, #tpu.memory_space<vmem>>, vector<4x384xbf16>
    tpu.vector_store %arg6[%c64, %c0_9], %13 {strides = array<i32>} : memref<144x384xbf16, #tpu.memory_space<vmem>>, vector<4x384xbf16>,
    %15 = vector.extract_strided_slice %4 {offsets = [0, 26], sizes = [4, 384], strides = [1, 1]} : vector<4x512xbf16> to vector<4x384xbf16>
    %c80 = arith.constant 80 : index
    %c0_10 = arith.constant 0 : index
    %16 = vector.load %arg6[%c80, %c0_10] : memref<144x384xbf16, #tpu.memory_space<vmem>>, vector<4x384xbf16>
    tpu.vector_store %arg6[%c80, %c0_10], %15 {strides = array<i32>} : memref<144x384xbf16, #tpu.memory_space<vmem>>, vector<4x384xbf16>,
    %17 = vector.extract_strided_slice %4 {offsets = [0, 48], sizes = [4, 384], strides = [1, 1]} : vector<4x512xbf16> to vector<4x384xbf16>
    %c96 = arith.constant 96 : index
    %c0_11 = arith.constant 0 : index
    %18 = vector.load %arg6[%c96, %c0_11] : memref<144x384xbf16, #tpu.memory_space<vmem>>, vector<4x384xbf16>
    tpu.vector_store %arg6[%c96, %c0_11], %17 {strides = array<i32>} : memref<144x384xbf16, #tpu.memory_space<vmem>>, vector<4x384xbf16>,
    %19 = vector.extract_strided_slice %4 {offsets = [0, 49], sizes = [4, 384], strides = [1, 1]} : vector<4x512xbf16> to vector<4x384xbf16>
    %c112 = arith.constant 112 : index
    %c0_12 = arith.constant 0 : index
    %20 = vector.load %arg6[%c112, %c0_12] : memref<144x384xbf16, #tpu.memory_space<vmem>>, vector<4x384xbf16>
    tpu.vector_store %arg6[%c112, %c0_12], %19 {strides = array<i32>} : memref<144x384xbf16, #tpu.memory_space<vmem>>, vector<4x384xbf16>,
    %21 = vector.extract_strided_slice %4 {offsets = [0, 50], sizes = [4, 384], strides = [1, 1]} : vector<4x512xbf16> to vector<4x384xbf16>
    %c128 = arith.constant 128 : index
    %c0_13 = arith.constant 0 : index
    %22 = vector.load %arg6[%c128, %c0_13] : memref<144x384xbf16, #tpu.memory_space<vmem>>, vector<4x384xbf16>
    tpu.vector_store %arg6[%c128, %c0_13], %21 {strides = array<i32>} : memref<144x384xbf16, #tpu.memory_space<vmem>>, vector<4x384xbf16>,
    %c0_14 = arith.constant 0 : index
    %c0_15 = arith.constant 0 : index
    %c0_16 = arith.constant 0 : index
    %23 = vector.load %arg2[%c0_14, %c0_15, %c0_16] : memref<2x4x144xbf16, #tpu.memory_space<vmem>>, vector<1x4x144xbf16>
    %24 = vector.shape_cast %23 : vector<1x4x144xbf16> to vector<4x144xbf16>
    %c0_17 = arith.constant 0 : index
    %c0_18 = arith.constant 0 : index
    %25 = vector.load %arg6[%c0_17, %c0_18] : memref<144x384xbf16, #tpu.memory_space<vmem>>, vector<144x384xbf16>
    %cst_19 = arith.constant dense<0.000000e+00> : vector<4x384xf32>
    %26 = tpu.matmul %24, %25, %cst_19 {dimension_numbers = #tpu.dot_dimension_numbers<[1], [0], [0], [1], [0, 0, 1, 1], [], []>} : vector<4x144xbf16>, vector<144x384xbf16>, vector<4x384xf32> -> vector<4x384xf32>
    %c0_20 = arith.constant 0 : index
    %c0_21 = arith.constant 0 : index
    %27 = vector.load %arg3[%c0_20, %c0_21] : memref<4x1xf32, #tpu.memory_space<vmem>>, vector<4x1xf32>
    %28 = vector.broadcast %27 : vector<4x1xf32> to vector<4x384xf32>
    %29 = arith.addf %26, %28 : vector<4x384xf32>
    %cst_22 = arith.constant 0.000000e+00 : f32
    %30 = vector.broadcast %cst_22 : f32 to vector<4x384xf32>
    %31 = arith.maximumf %29, %30 : vector<4x384xf32>
    %32 = tpu.iota {dimensions = array<i32: 1>} : vector<1x384xi32>
    %c24_i32 = arith.constant 24 : i32
    %c0_i32 = arith.constant 0 : i32
    %33 = arith.cmpi eq, %c24_i32, %c0_i32 : i32
    %c1_i32 = arith.constant 1 : i32
    %34 = arith.select %33, %c1_i32, %c24_i32 : i32
    %35 = vector.broadcast %34 : i32 to vector<1x384xi32>
    %36 = arith.remsi %32, %35 : vector<1x384xi32>
    %c0_i32_23 = arith.constant 0 : i32
    %37 = vector.broadcast %c0_i32_23 : i32 to vector<1x384xi32>
    %38 = arith.cmpi ne, %36, %37 : vector<1x384xi32>
    %c0_i32_24 = arith.constant 0 : i32
    %39 = vector.broadcast %c0_i32_24 : i32 to vector<1x384xi32>
    %40 = arith.cmpi slt, %36, %39 : vector<1x384xi32>
    %c0_i32_25 = arith.constant 0 : i32
    %41 = arith.cmpi slt, %34, %c0_i32_25 : i32
    %42 = vector.broadcast %41 : i1 to vector<1x384xi1>
    %43 = vector.broadcast %42 : vector<1x384xi1> to vector<1x384xi1>
    %44 = arith.xori %40, %43 : vector<1x384xi1>
    %45 = arith.andi %44, %38 : vector<1x384xi1>
    %46 = vector.broadcast %34 : i32 to vector<1x384xi32>
    %47 = arith.addi %36, %46 : vector<1x384xi32>
    %48 = arith.select %45, %47, %36 : vector<1x384xi1>, vector<1x384xi32>
    %c16_i32 = arith.constant 16 : i32
    %49 = vector.broadcast %c16_i32 : i32 to vector<1x384xi32>
    %50 = arith.cmpi slt, %48, %49 : vector<1x384xi32>
    %51 = arith.extui %50 : vector<1x384xi1> to vector<1x384xi32>
    %52 = arith.sitofp %51 : vector<1x384xi32> to vector<1x384xf32>
    %cst_26 = arith.constant 0.000000e+00 : bf16
    %53 = vector.broadcast %cst_26 : bf16 to vector<4x128xbf16>
    %c0_27 = arith.constant 0 : index
    %c0_28 = arith.constant 0 : index
    %54 = vector.load %arg5[%c0_27, %c0_28] : memref<4x640xbf16, #tpu.memory_space<vmem>>, vector<4x128xbf16>
    tpu.vector_store %arg5[%c0_27, %c0_28], %53 {strides = array<i32>} : memref<4x640xbf16, #tpu.memory_space<vmem>>, vector<4x128xbf16>,
    %cst_29 = arith.constant 0.000000e+00 : bf16
    %55 = vector.broadcast %cst_29 : bf16 to vector<4x128xbf16>
    %c0_30 = arith.constant 0 : index
    %c512 = arith.constant 512 : index
    %56 = vector.load %arg5[%c0_30, %c512] : memref<4x640xbf16, #tpu.memory_space<vmem>>, vector<4x128xbf16>
    tpu.vector_store %arg5[%c0_30, %c512], %55 {strides = array<i32>} : memref<4x640xbf16, #tpu.memory_space<vmem>>, vector<4x128xbf16>,
    %57 = vector.broadcast %52 : vector<1x384xf32> to vector<4x384xf32>
    %58 = arith.mulf %31, %57 : vector<4x384xf32>
    %59 = arith.truncf %58 : vector<4x384xf32> to vector<4x384xbf16>
    %c0_31 = arith.constant 0 : index
    %c128_32 = arith.constant 128 : index
    %60 = vector.load %arg5[%c0_31, %c128_32] : memref<4x640xbf16, #tpu.memory_space<vmem>>, vector<4x384xbf16>
    tpu.vector_store %arg5[%c0_31, %c128_32], %59 {strides = array<i32>} : memref<4x640xbf16, #tpu.memory_space<vmem>>, vector<4x384xbf16>,
    %c0_33 = arith.constant 0 : index
    %c103 = arith.constant 103 : index
    %61 = vector.load %arg5[%c0_33, %c103] : memref<4x640xbf16, #tpu.memory_space<vmem>>, vector<4x384xbf16>
    %c0_34 = arith.constant 0 : index
    %c0_35 = arith.constant 0 : index
    %62 = vector.load %arg6[%c0_34, %c0_35] : memref<144x384xbf16, #tpu.memory_space<vmem>>, vector<4x384xbf16>
    tpu.vector_store %arg6[%c0_34, %c0_35], %61 {strides = array<i32>} : memref<144x384xbf16, #tpu.memory_space<vmem>>, vector<4x384xbf16>,
    %c0_36 = arith.constant 0 : index
    %c104 = arith.constant 104 : index
    %63 = vector.load %arg5[%c0_36, %c104] : memref<4x640xbf16, #tpu.memory_space<vmem>>, vector<4x384xbf16>
    %c16_37 = arith.constant 16 : index
    %c0_38 = arith.constant 0 : index
    %64 = vector.load %arg6[%c16_37, %c0_38] : memref<144x384xbf16, #tpu.memory_space<vmem>>, vector<4x384xbf16>
    tpu.vector_store %arg6[%c16_37, %c0_38], %63 {strides = array<i32>} : memref<144x384xbf16, #tpu.memory_space<vmem>>, vector<4x384xbf16>,
    %c0_39 = arith.constant 0 : index
    %c105 = arith.constant 105 : index
    %65 = vector.load %arg5[%c0_39, %c105] : memref<4x640xbf16, #tpu.memory_space<vmem>>, vector<4x384xbf16>
    %c32_40 = arith.constant 32 : index
    %c0_41 = arith.constant 0 : index
    %66 = vector.load %arg6[%c32_40, %c0_41] : memref<144x384xbf16, #tpu.memory_space<vmem>>, vector<4x384xbf16>
    tpu.vector_store %arg6[%c32_40, %c0_41], %65 {strides = array<i32>} : memref<144x384xbf16, #tpu.memory_space<vmem>>, vector<4x384xbf16>,
    %c0_42 = arith.constant 0 : index
    %c127 = arith.constant 127 : index
    %67 = vector.load %arg5[%c0_42, %c127] : memref<4x640xbf16, #tpu.memory_space<vmem>>, vector<4x384xbf16>
    %c48_43 = arith.constant 48 : index
    %c0_44 = arith.constant 0 : index
    %68 = vector.load %arg6[%c48_43, %c0_44] : memref<144x384xbf16, #tpu.memory_space<vmem>>, vector<4x384xbf16>
    tpu.vector_store %arg6[%c48_43, %c0_44], %67 {strides = array<i32>} : memref<144x384xbf16, #tpu.memory_space<vmem>>, vector<4x384xbf16>,
    %c0_45 = arith.constant 0 : index
    %c128_46 = arith.constant 128 : index
    %69 = vector.load %arg5[%c0_45, %c128_46] : memref<4x640xbf16, #tpu.memory_space<vmem>>, vector<4x384xbf16>
    %c64_47 = arith.constant 64 : index
    %c0_48 = arith.constant 0 : index
    %70 = vector.load %arg6[%c64_47, %c0_48] : memref<144x384xbf16, #tpu.memory_space<vmem>>, vector<4x384xbf16>
    tpu.vector_store %arg6[%c64_47, %c0_48], %69 {strides = array<i32>} : memref<144x384xbf16, #tpu.memory_space<vmem>>, vector<4x384xbf16>,
    %c0_49 = arith.constant 0 : index
    %c129 = arith.constant 129 : index
    %71 = vector.load %arg5[%c0_49, %c129] : memref<4x640xbf16, #tpu.memory_space<vmem>>, vector<4x384xbf16>
    %c80_50 = arith.constant 80 : index
    %c0_51 = arith.constant 0 : index
    %72 = vector.load %arg6[%c80_50, %c0_51] : memref<144x384xbf16, #tpu.memory_space<vmem>>, vector<4x384xbf16>
    tpu.vector_store %arg6[%c80_50, %c0_51], %71 {strides = array<i32>} : memref<144x384xbf16, #tpu.memory_space<vmem>>, vector<4x384xbf16>,
    %c0_52 = arith.constant 0 : index
    %c151 = arith.constant 151 : index
    %73 = vector.load %arg5[%c0_52, %c151] : memref<4x640xbf16, #tpu.memory_space<vmem>>, vector<4x384xbf16>
    %c96_53 = arith.constant 96 : index
    %c0_54 = arith.constant 0 : index
    %74 = vector.load %arg6[%c96_53, %c0_54] : memref<144x384xbf16, #tpu.memory_space<vmem>>, vector<4x384xbf16>
    tpu.vector_store %arg6[%c96_53, %c0_54], %73 {strides = array<i32>} : memref<144x384xbf16, #tpu.memory_space<vmem>>, vector<4x384xbf16>,
    %c0_55 = arith.constant 0 : index
    %c152 = arith.constant 152 : index
    %75 = vector.load %arg5[%c0_55, %c152] : memref<4x640xbf16, #tpu.memory_space<vmem>>, vector<4x384xbf16>
    %c112_56 = arith.constant 112 : index
    %c0_57 = arith.constant 0 : index
    %76 = vector.load %arg6[%c112_56, %c0_57] : memref<144x384xbf16, #tpu.memory_space<vmem>>, vector<4x384xbf16>
    tpu.vector_store %arg6[%c112_56, %c0_57], %75 {strides = array<i32>} : memref<144x384xbf16, #tpu.memory_space<vmem>>, vector<4x384xbf16>,
    %c0_58 = arith.constant 0 : index
    %c153 = arith.constant 153 : index
    %77 = vector.load %arg5[%c0_58, %c153] : memref<4x640xbf16, #tpu.memory_space<vmem>>, vector<4x384xbf16>
    %c128_59 = arith.constant 128 : index
    %c0_60 = arith.constant 0 : index
    %78 = vector.load %arg6[%c128_59, %c0_60] : memref<144x384xbf16, #tpu.memory_space<vmem>>, vector<4x384xbf16>
    tpu.vector_store %arg6[%c128_59, %c0_60], %77 {strides = array<i32>} : memref<144x384xbf16, #tpu.memory_space<vmem>>, vector<4x384xbf16>,
    %c1 = arith.constant 1 : index
    %c0_61 = arith.constant 0 : index
    %c0_62 = arith.constant 0 : index
    %79 = vector.load %arg2[%c1, %c0_61, %c0_62] : memref<2x4x144xbf16, #tpu.memory_space<vmem>>, vector<1x4x144xbf16>
    %80 = vector.shape_cast %79 : vector<1x4x144xbf16> to vector<4x144xbf16>
    %c0_63 = arith.constant 0 : index
    %c0_64 = arith.constant 0 : index
    %81 = vector.load %arg6[%c0_63, %c0_64] : memref<144x384xbf16, #tpu.memory_space<vmem>>, vector<144x384xbf16>
    %cst_65 = arith.constant dense<0.000000e+00> : vector<4x384xf32>
    %82 = tpu.matmul %80, %81, %cst_65 {dimension_numbers = #tpu.dot_dimension_numbers<[1], [0], [0], [1], [0, 0, 1, 1], [], []>} : vector<4x144xbf16>, vector<144x384xbf16>, vector<4x384xf32> -> vector<4x384xf32>
    %83 = vector.broadcast %52 : vector<1x384xf32> to vector<4x384xf32>
    %84 = arith.mulf %82, %83 : vector<4x384xf32>
    %cst_66 = arith.constant dense<0.000000e+00> : vector<4xf32>
    %85 = vector.multi_reduction <add>, %84, %cst_66 [1] : vector<4x384xf32> to vector<4xf32>
    %86 = vector.shape_cast %85 : vector<4xf32> to vector<4x1xf32>
    %87 = arith.mulf %84, %82 : vector<4x384xf32>
    %cst_67 = arith.constant dense<0.000000e+00> : vector<4xf32>
    %88 = vector.multi_reduction <add>, %87, %cst_67 [1] : vector<4x384xf32> to vector<4xf32>
    %89 = vector.shape_cast %88 : vector<4xf32> to vector<4x1xf32>
    %cst_68 = arith.constant 3.906250e-03 : f32
    %90 = vector.broadcast %cst_68 : f32 to vector<4x1xf32>
    %91 = arith.mulf %86, %90 : vector<4x1xf32>
    %cst_69 = arith.constant 3.906250e-03 : f32
    %92 = vector.broadcast %cst_69 : f32 to vector<4x1xf32>
    %93 = arith.mulf %89, %92 : vector<4x1xf32>
    %94 = arith.mulf %91, %91 : vector<4x1xf32>
    %95 = arith.subf %93, %94 : vector<4x1xf32>
    %cst_70 = arith.constant 9.99999974E-6 : f32
    %96 = vector.broadcast %cst_70 : f32 to vector<4x1xf32>
    %97 = arith.addf %95, %96 : vector<4x1xf32>
    %98 = math.rsqrt %97 : vector<4x1xf32>
    %cst_71 = arith.constant 0.000000e+00 : f32
    %99 = vector.broadcast %cst_71 : f32 to vector<4x1xf32>
    %100 = arith.subf %99, %91 : vector<4x1xf32>
    %101 = arith.mulf %100, %98 : vector<4x1xf32>
    %102 = vector.extract_strided_slice %3 {offsets = [0, 25], sizes = [4, 384], strides = [1, 1]} : vector<4x512xf32> to vector<4x384xf32>
    %103 = vector.broadcast %98 : vector<4x1xf32> to vector<4x384xf32>
    %104 = arith.mulf %82, %103 : vector<4x384xf32>
    %105 = vector.broadcast %101 : vector<4x1xf32> to vector<4x384xf32>
    %106 = arith.addf %104, %105 : vector<4x384xf32>
    %107 = arith.addf %102, %106 : vector<4x384xf32>
    %cst_72 = arith.constant 0.000000e+00 : f32
    %108 = vector.broadcast %cst_72 : f32 to vector<4x384xf32>
    %109 = arith.maximumf %107, %108 : vector<4x384xf32>
    %c0_73 = arith.constant 0 : index
    %c0_74 = arith.constant 0 : index
    %c0_75 = arith.constant 0 : index
    %110 = vector.load %arg4[%c0_73, %c0_74, %c0_75] : memref<1x4x384xf32, #tpu.memory_space<vmem>>, vector<1x4x384xf32>
    %111 = vector.shape_cast %110 : vector<1x4x384xf32> to vector<4x384xf32>
    %112 = vector.shape_cast %109 : vector<4x384xf32> to vector<1x4x384xf32>
    tpu.vector_store %arg4[%c0_73, %c0_74, %c0_75], %112 {strides = array<i32>} : memref<1x4x384xf32, #tpu.memory_space<vmem>>, vector<1x4x384xf32>,
    return
  }
  func.func @transform_0(%arg0: i32) -> (i32, i32, i32) {
    %c0_i32 = arith.constant 0 : i32
    %c0_i32_0 = arith.constant 0 : i32
    %c0_i32_1 = arith.constant 0 : i32
    return %arg0, %c0_i32, %c0_i32_0 : i32, i32, i32
  }
  func.func @transform_1(%arg0: i32) -> (i32, i32, i32) {
    %c0_i32 = arith.constant 0 : i32
    %c0_i32_0 = arith.constant 0 : i32
    %c0_i32_1 = arith.constant 0 : i32
    %c0_i32_2 = arith.constant 0 : i32
    return %c0_i32, %c0_i32_0, %c0_i32_1 : i32, i32, i32
  }
  func.func @transform_2(%arg0: i32) -> (i32, i32) {
    %c0_i32 = arith.constant 0 : i32
    %c0_i32_0 = arith.constant 0 : i32
    %c0_i32_1 = arith.constant 0 : i32
    return %c0_i32, %c0_i32_0 : i32, i32
  }
  func.func @transform_3(%arg0: i32) -> (i32, i32, i32) {
    %c0_i32 = arith.constant 0 : i32
    %c0_i32_0 = arith.constant 0 : i32
    %c0_i32_1 = arith.constant 0 : i32
    return %arg0, %c0_i32, %c0_i32_0 : i32, i32, i32
  }
}

</mosaic_0001>

<bundles_post_ra>
// kernel: resnet_block.1
= control target key start
LH: loop header
LB: loop body
LE: loop exit
PB: predicated region body
PF: predicated region fallthrough
CT: control target
= control target key end

     0   :  { %s1579_s12 = smov 0   ;;  %s1824_s0 = inlined_call_operand.vmem [shape: f32[2,4,512], index: 0, kind: input, shape index: {}]   ;;  %s1825_s1 = inlined_call_operand.vmem [shape: bf16[2,4,144], index: 1, kind: input, shape index: {}]   ;;  %s1826_s2 = inlined_call_operand.vmem [shape: f32[4,1], index: 2, kind: input, shape index: {}]   ;;  %s1827_s3 = inlined_call_operand.vmem [shape: f32[2,4,384], index: 3, kind: output, shape index: {}]  }
   0x1 LB: > { %s1391_s13 = sadd.s32 4294967295, %s1541_s12   ;;  %p1395_p0 = scmp.ge.s32.totalorder %s1541_s12, 1  ;;  %s1541_s12 = sphi %s1579_s12, %s13_s12  }
   0x2   : > { %p137_p1 = scmp.lt.s32.totalorder %s1541_s12, 3 }
   0x4   : > { %p138_p2 = pnand %p1395_p0, %p137_p1 }
   0x5   : > { %p1589_p3 = scmp.lt.s32.totalorder (!%p138_p2), %s1391_s13, 1  ;;  %s1544_s19 = smov (!%p138_p2), 80  }
   0x6   : > { %141 = sbr.rel (%p138_p2) target bundleno = 1185 (0x4a1), region = 32  ;;  %s1545_s20 = smov (!%p138_p2), 79  }
   0x7   : > { %s1546_s21 = smov (!%p138_p2), 102   ;;  %s1547_s22 = smov (!%p138_p2), 103  }
   0x8   : > { %s1548_s23 = smov (!%p138_p2), 104   ;;  %s1549_s24 = smov (!%p138_p2), 126  }
   0x9   : > { %s1550_s25 = smov (!%p138_p2), 127   ;;  %s1551_s26 = smov (!%p138_p2), 78  }
   0xa   : > { %s1554_s4 = smov (!%p138_p2), 105   ;;  %s1555_s5 = smov (!%p138_p2), 1  }
   0xb   : > { %v1543_v0 = vmov 0   ;;  %s1834_s13 = smov (!%p1589_p3, %s1391_s13), 1  ;;  %v1648_v8 = vld.sshfl [vmem:[%s1825_s1] sm:$0x33 pattern:$0x76325410] }
   0xc   : > { %196 = vst [vmem:[#allocation3 + $0x90] sm:$0xff] %v1543_v0  ;;  %197 = vst [vmem:[#allocation3 + $0x98] sm:$0xf] %v1543_v0  ;;  %590 = vmatprep.subr.bf16.mxu1 %v1543_v0  ;;  %1506 = vset.pattern.permute.xlu0 %v1543_v0  ;;  %s1471_s15 = sshll.u32 %s1834_s13, 4  ;;  %v399_v9 = vcombine.high %v1648_v8, %v1648_v8  ;;  %vm545_vm0 = vcmask 130048   ;;  %vm241_vm1 = vcmask 1043456  }
   0xd   : > { %172 = vst [vmem:[#allocation3] sm:$0xff] %v1543_v0  ;;  %173 = vst [vmem:[#allocation3 + $0x8] sm:$0xf] %v1543_v0  ;;  %s1635_s18 = scalar_lea.vmem %s1824_s0, %s1471_s15  ;;  %v385_v10 = vld [vmem:[%s1826_s2] sm:$0xf]  ;;  %vm313_vm2 = vcmask 654336  }
   0xe   : > { %174 = vst [vmem:[#allocation3 + $0xc] sm:$0xff] %v1543_v0  ;;  %175 = vst [vmem:[#allocation3 + $0x14] sm:$0xf] %v1543_v0  ;;  %v208_v1 = vld [vmem:[%s1635_s18] sm:$0xff]  ;;  %v209_v2 = vld [vmem:[%s1635_s18 + $0x8] sm:$0xff]  ;;  %1431 = vmatprep.mubr.msk.bf16.mxu1 %vm545_vm0, %v399_v9  ;;  %1430 = vmatprep.mubr.msk.bf16.mxu0 %vm545_vm0, %v399_v9  ;;  %vm327_vm3 = vcmask 646144  }
   0xf   : > { %176 = vst [vmem:[#allocation3 + $0x18] sm:$0xff] %v1543_v0  ;;  %177 = vst [vmem:[#allocation3 + $0x20] sm:$0xf] %v1543_v0  ;;  %v212_v3 = vcombine.high %v208_v1, %v208_v1  ;;  %v213_v4 = vcombine.high %v209_v2, %v209_v2  ;;  %v1473_v7 = vpack.c.bf16 %v209_v2, %v209_v2  ;;  %vm299_vm4 = vcmask 834560   ;;  %s1556_s6 = smov 23   ;;  %s1557_s7 = smov 24  }
  0x10   : > { %179 = vst [vmem:[#allocation3 + $0x2c] sm:$0xf] %v1543_v0  ;;  %180 = vst [vmem:[#allocation3 + $0x30] sm:$0xff] %v1543_v0  ;;  %vm285_vm5 = vcmask 842752   ;;  %vm271_vm6 = vcmask 850944   ;;  %vm257_vm7 = vcmask 1031168  }
  0x11   : > { %181 = vst [vmem:[#allocation3 + $0x38] sm:$0xf] %v1543_v0  ;;  %183 = vst [vmem:[#allocation3 + $0x44] sm:$0xf] %v1543_v0  ;;  %v1472_v5 = vpack.c.bf16 %v212_v3, %v208_v1  ;;  %v1474_v6 = vpack.c.bf16 %v213_v4, %v209_v2  ;;  %vm243_vm8 = vcmask 1039360   ;;  %vm341_vm9 = vcmask 637952  }
  0x12   : > { %184 = vst [vmem:[#allocation3 + $0x48] sm:$0xff] %v1543_v0  ;;  %185 = vst [vmem:[#allocation3 + $0x50] sm:$0xf] %v1543_v0  ;;  %s1558_s8 = smov 25   ;;  %s1475_s11 = smul.u32 12, %s1834_s13 }
  0x13   : > { %187 = vst [vmem:[#allocation3 + $0x5c] sm:$0xf] %v1543_v0  ;;  %188 = vst [vmem:[#allocation3 + $0x60] sm:$0xff] %v1543_v0  ;;  %306 = vrot.lane.b32.xlu1 %v1472_v5, %s1544_s19  ;;  %320 = vrot.lane.b32.xlu0 %v1472_v5, %s1545_s20 }
  0x14   : > { %189 = vst [vmem:[#allocation3 + $0x68] sm:$0xf] %v1543_v0  ;;  %191 = vst [vmem:[#allocation3 + $0x74] sm:$0xf] %v1543_v0  ;;  %s170_s16 = scalar_lea.vmem %s1827_s3, %s1475_s11 }
  0x15   : > { %192 = vst [vmem:[#allocation3 + $0x78] sm:$0xff] %v1543_v0  ;;  %193 = vst [vmem:[#allocation3 + $0x80] sm:$0xf] %v1543_v0 }
  0x16   : > { %195 = vst [vmem:[#allocation3 + $0x8c] sm:$0xf] %v1543_v0  ;;  %199 = vst [vmem:[#allocation3 + $0xa4] sm:$0xf] %v1543_v0 }
  0x17   : > { %200 = vst [vmem:[#allocation3 + $0xa8] sm:$0xff] %v1543_v0  ;;  %201 = vst [vmem:[#allocation3 + $0xb0] sm:$0xf] %v1543_v0  ;;  %308 = vrot.lane.b32.xlu1 %v1474_v6, %s1544_s19  ;;  %322 = vrot.lane.b32.xlu0 %v1474_v6, %s1545_s20 }
  0x18   : > { %203 = vst [vmem:[#allocation3 + $0xbc] sm:$0xf] %v1543_v0  ;;  %204 = vst [vmem:[#allocation3 + $0xc0] sm:$0xff] %v1543_v0 }
  0x19   : > { %205 = vst [vmem:[#allocation3 + $0xc8] sm:$0xf] %v1543_v0  ;;  %207 = vst [vmem:[#allocation3 + $0xd4] sm:$0xf] %v1543_v0 }
  0x1a   : > { %694 = vst [vmem:[#allocation2] sm:$0x3] %v1543_v0  ;;  %695 = vst [vmem:[#allocation2 + $0x8] sm:$0x3] %v1543_v0 }
  0x1b   : > { %230 = vst [vmem:[#allocation3] sm:$0x33] %v1472_v5  ;;  %294 = vrot.lane.b32.xlu1 %v1474_v6, %s1546_s21  ;;  %292 = vrot.lane.b32.xlu0 %v1472_v5, %s1546_s21  ;;  %231 = vst [vmem:[#allocation3 + $0x8] sm:$0x3] %v1473_v7 }
  0x1f   : > { %280 = vrot.lane.b32.xlu1 %v1474_v6, %s1547_s22  ;;  %278 = vrot.lane.b32.xlu0 %v1472_v5, %s1547_s22 }
  0x23   : > { %266 = vrot.lane.b32.xlu1 %v1474_v6, %s1548_s23  ;;  %264 = vrot.lane.b32.xlu0 %v1472_v5, %s1548_s23 }
  0x27   : > { %252 = vrot.lane.b32.xlu1 %v1474_v6, %s1549_s24  ;;  %250 = vrot.lane.b32.xlu0 %v1472_v5, %s1549_s24 }
  0x2b   : > { %237 = vrot.lane.b32.xlu1 %v1474_v6, %s1550_s25  ;;  %235 = vrot.lane.b32.xlu0 %v1472_v5, %s1550_s25 }
  0x2f   : > { %336 = vrot.lane.b32.xlu1 %v1474_v6, %s1551_s26  ;;  %334 = vrot.lane.b32.xlu0 %v1472_v5, %s1551_s26 }
  0x33   : > { %388 = vperm.xlu0 %1506, %v385_v10  }
  0x85   : > { %v307_v11 = vpop.permute.xlu1 %306  ;;  %v321_v12 = vpop.permute.xlu0 %320 }
  0x86   : > { %v310_v13 = vrot.slane %v307_v11, 4  ;;  %v324_v16 = vrot.slane %v321_v12, 4 }
  0x89   : > { %v309_v14 = vpop.permute.xlu1 %308  ;;  %v323_v15 = vpop.permute.xlu0 %322 }
  0x8a   : > { %v311_v17 = vrot.slane %v309_v14, 4  ;;  %v325_v18 = vrot.slane %v323_v15, 4 }
  0x8c   : > { %v312_v19 = vsel %vm241_vm1, %v310_v13, %v311_v17  ;;  %v315_v20 = vsel %vm313_vm2, %v309_v14, %v311_v17  ;;  %v326_v21 = vsel %vm241_vm1, %v324_v16, %v325_v18  ;;  %v329_v22 = vsel %vm327_vm3, %v323_v15, %v325_v18 }
  0x8d   : > { %v314_v23 = vsel %vm313_vm2, %v307_v11, %v312_v19  ;;  %319 = vst [vmem:[#allocation3 + $0x98] sm:$0x3] %v315_v20  ;;  %v328_v24 = vsel %vm327_vm3, %v321_v12, %v326_v21  ;;  %333 = vst [vmem:[#allocation3 + $0xb0] sm:$0x3] %v329_v22  ;;  %v295_v25 = vpop.permute.xlu1 %294  ;;  %v293_v26 = vpop.permute.xlu0 %292 }
  0x8e   : > { %318 = vst [vmem:[#allocation3 + $0x90] sm:$0x33] %v314_v23  ;;  %332 = vst [vmem:[#allocation3 + $0xa8] sm:$0x33] %v328_v24  ;;  %v297_v27 = vrot.slane %v295_v25, 4  ;;  %v296_v28 = vrot.slane %v293_v26, 4 }
  0x90   : > { %v301_v29 = vsel %vm299_vm4, %v295_v25, %v297_v27  ;;  %v298_v30 = vsel %vm241_vm1, %v296_v28, %v297_v27 }
  0x91   : > { %305 = vst [vmem:[#allocation3 + $0x80] sm:$0x3] %v301_v29  ;;  %v300_v31 = vsel %vm299_vm4, %v293_v26, %v298_v30  ;;  %v281_v32 = vpop.permute.xlu1 %280  ;;  %v279_v33 = vpop.permute.xlu0 %278 }
  0x92   : > { %304 = vst [vmem:[#allocation3 + $0x78] sm:$0x33] %v300_v31  ;;  %v283_v34 = vrot.slane %v281_v32, 4  ;;  %v282_v35 = vrot.slane %v279_v33, 4  ;;  %v349_v31 = vld [vmem:[#allocation3] sm:$0xff] }
  0x94   : > { %v287_v36 = vsel %vm285_vm5, %v281_v32, %v283_v34  ;;  %v284_v37 = vsel %vm241_vm1, %v282_v35, %v283_v34  ;;  %v1509_v38 = vld [vmem:[#allocation3 + $0xb0] ss:$12 sps:$4 sm:$0xff]   ;;  %v1510_v51 = vld [vmem:[#allocation3 + $0x98] ss:$12 sps:$4 sm:$0xff]   ;;  %v1404_v34 = vcombine.high %v349_v31, %v1543_v0 }
  0x95   : > { %291 = vst [vmem:[#allocation3 + $0x68] sm:$0x3] %v287_v36  ;;  %v286_v39 = vsel %vm285_vm5, %v279_v33, %v284_v37  ;;  %v267_v40 = vpop.permute.xlu1 %266  ;;  %v265_v41 = vpop.permute.xlu0 %264  ;;  %v377_v42 = vld [vmem:[#allocation3 + $0xa8] sm:$0xff]  ;;  %v373_v43 = vld [vmem:[#allocation3 + $0x90] sm:$0xff]  ;;  %591 = vmatpush1.bf16.msra.mxu1 %v1509_v38  ;;  %v1403_v37 = vcombine.low %v349_v31, %v1543_v0 }
  0x96   : > { %290 = vst [vmem:[#allocation3 + $0x60] sm:$0x33] %v286_v39  ;;  %v269_v44 = vrot.slane %v267_v40, 4  ;;  %v268_v45 = vrot.slane %v265_v41, 4  ;;  %v1425_v46 = vcombine.high %v377_v42, %v1543_v0  ;;  %v1424_v47 = vcombine.low %v377_v42, %v1543_v0  ;;  %592 = vmatprep.subr.bf16.mxu1 %v1543_v0  ;;  %v1516_v33 = vld [vmem:[#allocation3 + $0x8] ss:$12 sps:$4 sm:$0xff]  }
  0x97   : > { %v1422_v50 = vcombine.high %v373_v43, %v1543_v0  ;;  %v1421_v59 = vcombine.low %v373_v43, %v1543_v0 }
  0x98   : > { %v273_v48 = vsel %vm271_vm6, %v267_v40, %v269_v44  ;;  %v270_v49 = vsel %vm241_vm1, %v268_v45, %v269_v44  ;;  %549 = vmatprep.subr.bf16.mxu0 %v1425_v46  ;;  %v1511_v62 = vld [vmem:[#allocation3 + $0x80] ss:$12 sps:$4 sm:$0xff]  }
  0x99   : > { %277 = vst [vmem:[#allocation3 + $0x50] sm:$0x3] %v273_v48  ;;  %v272_v52 = vsel %vm271_vm6, %v265_v41, %v270_v49  ;;  %550 = vmatpush1.bf16.msra.mxu0 %v1424_v47  ;;  %v253_v53 = vpop.permute.xlu1 %252  ;;  %v251_v54 = vpop.permute.xlu0 %250  ;;  %v369_v55 = vld [vmem:[#allocation3 + $0x78] sm:$0xff]  ;;  %593 = vmatpush1.bf16.msra.mxu1 %v1510_v51  ;;  %v633_v41 = vlaneseq }
  0x9a   : > { %276 = vst [vmem:[#allocation3 + $0x48] sm:$0x33] %v272_v52  ;;  %v255_v56 = vrot.slane %v253_v53, 4  ;;  %551 = vmatprep.subr.bf16.mxu0 %v1422_v50  ;;  %v254_v57 = vrot.slane %v251_v54, 4  ;;  %v1419_v58 = vcombine.high %v369_v55, %v1543_v0  ;;  %594 = vmatprep.subr.bf16.mxu1 %v1543_v0  ;;  %v1418_v7 = vcombine.low %v369_v55, %v1543_v0 }
  0x9b   : > { %v634_v42 = vand.u32 127, %v633_v41 }
  0x9c   : > { %v259_v60 = vsel %vm257_vm7, %v253_v53, %v255_v56  ;;  %v256_v61 = vsel %vm241_vm1, %v254_v57, %v255_v56  ;;  %v1512_v11 = vld [vmem:[#allocation3 + $0x68] ss:$12 sps:$4 sm:$0xff]  }
  0x9d   : > { %263 = vst [vmem:[#allocation3 + $0x38] sm:$0x3] %v259_v60  ;;  %v258_v63 = vsel %vm257_vm7, %v251_v54, %v256_v61  ;;  %552 = vmatpush1.bf16.msra.mxu0 %v1421_v59  ;;  %v238_v1 = vpop.permute.xlu1 %237  ;;  %v236_v2 = vpop.permute.xlu0 %235  ;;  %v365_v3 = vld [vmem:[#allocation3 + $0x60] sm:$0xff]  ;;  %595 = vmatpush1.bf16.msra.mxu1 %v1511_v62  ;;  %v636_v43 = vadd.s32 256, %v634_v42  ;;  %v635_v46 = vadd.s32 128, %v634_v42 }
  0x9e   : > { %262 = vst [vmem:[#allocation3 + $0x30] sm:$0x33] %v258_v63  ;;  %v240_v4 = vrot.slane %v238_v1, 4  ;;  %553 = vmatprep.subr.bf16.mxu0 %v1419_v58  ;;  %v239_v5 = vrot.slane %v236_v2, 4  ;;  %v1416_v6 = vcombine.high %v365_v3, %v1543_v0  ;;  %596 = vmatprep.subr.bf16.mxu1 %v1543_v0  ;;  %v1415_v19 = vcombine.low %v365_v3, %v1543_v0 }
  0x9f   : > { %v1704_v44 = vmul.u32.u64.low 2863311531, %v636_v43  ;;  %v1705_v45 = vmul.u32.u64.high 2863311531, %v636_v43, %v1704_v44  ;;  %v1707_v47 = vmul.u32.u64.low 2863311531, %v634_v42  ;;  %v1708_v48 = vmul.u32.u64.high 2863311531, %v634_v42, %v1707_v47 }
  0xa0   : > { %v245_v9 = vsel %vm243_vm8, %v238_v1, %v240_v4  ;;  %v242_v10 = vsel %vm241_vm1, %v239_v5, %v240_v4  ;;  %v1513_v22 = vld [vmem:[#allocation3 + $0x50] ss:$12 sps:$4 sm:$0xff]   ;;  %v1710_v49 = vmul.u32.u64.low 2863311531, %v635_v46  ;;  %v1711_v50 = vmul.u32.u64.high 2863311531, %v635_v46, %v1710_v49 }
  0xa1   : > { %249 = vst [vmem:[#allocation3 + $0x20] sm:$0x3] %v245_v9  ;;  %v244_v12 = vsel %vm243_vm8, %v236_v2, %v242_v10  ;;  %554 = vmatpush1.bf16.msra.mxu0 %v1418_v7  ;;  %v337_v13 = vpop.permute.xlu1 %336  ;;  %v361_v14 = vld [vmem:[#allocation3 + $0x48] sm:$0xff]  ;;  %v335_v15 = vpop.permute.xlu0 %334  ;;  %597 = vmatpush1.bf16.msra.mxu1 %v1512_v11  ;;  %v665_v51 = vshrl.u32 %v1705_v45, 4  ;;  %v643_v53 = vshrl.u32 %v1708_v48, 4  ;;  %v1553_v11 = vmov 0.0  }
  0xa2   : > { %248 = vst [vmem:[#allocation3 + $0x18] sm:$0x33] %v244_v12  ;;  %555 = vmatprep.subr.bf16.mxu0 %v1416_v6  ;;  %v339_v16 = vrot.slane %v337_v13, 4  ;;  %v1413_v17 = vcombine.high %v361_v14, %v1543_v0  ;;  %v338_v18 = vrot.slane %v335_v15, 4  ;;  %598 = vmatprep.subr.bf16.mxu1 %v1543_v0  ;;  %v1412_v26 = vcombine.low %v361_v14, %v1543_v0 }
  0xa3   : > { %v666_v52 = vmul.u32 24, %v665_v51  ;;  %v644_v55 = vmul.u32 24, %v643_v53  ;;  %v1552_v3 = vmov 1983009808  }
  0xa4   : > { %v343_v20 = vsel %vm341_vm9, %v337_v13, %v339_v16  ;;  %v340_v21 = vsel %vm241_vm1, %v338_v18, %v339_v16  ;;  %v1514_v27 = vld [vmem:[#allocation3 + $0x38] ss:$12 sps:$4 sm:$0xff]   ;;  %v707_v4 = vunpack.c.l.s4 %v1552_v3  ;;  %v710_v13 = vshrl.u32 %v633_v41, 7 }
  0xa5   : > { %556 = vmatpush1.bf16.msra.mxu0 %v1415_v19  ;;  %347 = vst [vmem:[#allocation3 + $0xc8] sm:$0x3] %v343_v20  ;;  %v342_v23 = vsel %vm341_vm9, %v335_v15, %v340_v21  ;;  %v357_v24 = vld [vmem:[#allocation3 + $0x30] sm:$0xff]  ;;  %599 = vmatpush1.bf16.msra.mxu1 %v1513_v22  ;;  %v667_v54 = vsub.s32 %v636_v43, %v666_v52 }
  0xa6   : > { %557 = vmatprep.subr.bf16.mxu0 %v1413_v17  ;;  %346 = vst [vmem:[#allocation3 + $0xc0] sm:$0x33] %v342_v23  ;;  %v1410_v25 = vcombine.high %v357_v24, %v1543_v0  ;;  %600 = vmatprep.subr.bf16.mxu1 %v1543_v0  ;;  %v1409_v30 = vcombine.low %v357_v24, %v1543_v0  ;;  %v708_v16 = vunpack.c.0.s8 %v707_v4  ;;  %v1748_v47 = vld.sshfl [vmem:[%s1825_s1 + $0x4] sm:$0x33 pattern:$0x76325410] }
  0xa7   : > { %vm672_vm10 = vcmp.ne.s32.totalorder %v667_v54, 0  ;;  %vm675_vm11 = vcmp.lt.s32.totalorder %v667_v54, 0  ;;  %v645_v57 = vsub.s32 %v634_v42, %v644_v55  ;;  %v681_v59 = vadd.s32 24, %v667_v54 }
  0xa8   : > { %v1515_v32 = vld [vmem:[#allocation3 + $0x20] ss:$12 sps:$4 sm:$0xff]   ;;  %vm678_vm12 = vmand %vm675_vm11, %vm672_vm10  ;;  %v1035_v48 = vcombine.high %v1748_v47, %v1748_v47  ;;  %vm922_vm11 = vcmask 859136  }
  0xa9   : > { %558 = vmatpush1.bf16.msra.mxu0 %v1412_v26  ;;  %v353_v28 = vld [vmem:[#allocation3 + $0x18] sm:$0xff]  ;;  %601 = vmatpush1.bf16.msra.mxu1 %v1514_v27  ;;  %vm670_vm13 = vcmp.ne.s32.totalorder %v645_v57, 0  ;;  %vm673_vm14 = vcmp.lt.s32.totalorder %v645_v57, 0  ;;  %v684_v60 = vsel %vm678_vm12, %v681_v59, %v667_v54  ;;  %v679_v62 = vadd.s32 24, %v645_v57 }
  0xaa   : > { %559 = vmatprep.subr.bf16.mxu0 %v1410_v25  ;;  %v1407_v29 = vcombine.high %v353_v28, %v1543_v0  ;;  %602 = vmatprep.subr.bf16.mxu1 %v1543_v0  ;;  %v1406_v35 = vcombine.low %v353_v28, %v1543_v0  ;;  %vm1716_vm3 = vmand %vm673_vm14, %vm670_vm13  ;;  %vm687_vm7 = vcmp.lt.s32.totalorder %v684_v60, 16  ;;  %v711_v27 = vsub.s32 %v708_v16, %v710_v13 }
  0xab   : > { %v682_v7 = vsel %vm1716_vm3, %v679_v62, %v645_v57  ;;  %v1728_v12 = vsel %vm687_vm7, 1.0, %v1553_v11  ;;  %vm747_vm12 = vcmask 203776  }
  0xac   : > { %v1517_v39 = vld [vmem:[#allocation3 + $0xc8] ss:$12 sps:$4 sm:$0xff]   ;;  %vm685_vm9 = vcmp.lt.s32.totalorder %v682_v7, 16 }
  0xad   : > { %560 = vmatpush1.bf16.msra.mxu0 %v1409_v30  ;;  %603 = vmatpush1.bf16.msra.mxu1 %v1515_v32  ;;  %v381_v36 = vld [vmem:[#allocation3 + $0xc0] sm:$0xff]  ;;  %v1731_v24 = vsel %vm685_vm9, 1.0, %v1553_v11 }
  0xae   : > { %561 = vmatprep.subr.bf16.mxu0 %v1407_v29  ;;  %604 = vmatprep.subr.bf16.mxu1 %v1543_v0  ;;  %v1428_v38 = vcombine.high %v381_v36, %v1543_v0  ;;  %v1427_v40 = vcombine.low %v381_v36, %v1543_v0  ;;  %v389_v5 = vpop.permute.xlu0 %388 }
  0xb1   : > { %562 = vmatpush1.bf16.msra.mxu0 %v1406_v35  ;;  %605 = vmatpush1.bf16.msra.mxu1 %v1516_v33 }
  0xb2   : > { %563 = vmatprep.subr.bf16.mxu0 %v1404_v34  ;;  %620 = vmatprep.subr.bf16.mxu1 %v1543_v0 }
  0xb5   : > { %564 = vmatpush1.bf16.msra.mxu0 %v1403_v37  ;;  %621 = vmatpush2.bf16.msra.mxu1 %v1517_v39 }
  0xb6   : > { %579 = vmatprep.subr.bf16.mxu0 %v1428_v38  ;;  %1225 = vmatprep.subr.bf16.mxu1 %v1543_v0 }
  0xb8   : > { %623 = vmatmul.mubr.bf16.vlgmr.msra.gmra.mxu1 %v1648_v8 }
  0xb9   : > { %580 = vmatpush2.bf16.msra.mxu0 %v1427_v40  ;;  %1468 = vmatprep.mubr.msk.bf16.mxu1 %vm545_vm0, %v1035_v48 }
  0xbc   : > { %582 = vmatmul.mubr.bf16.vlgmr.msra.gmra.mxu0 %v1648_v8  ;;  %v654_v8 = vshrl.u32 %v1711_v50, 4 }
  0xbd   : > { %1467 = vmatprep.mubr.msk.bf16.mxu0 %vm545_vm0, %v1035_v48  ;;  %vm840_vm0 = vcmask 7168  }
  0xbe   : > { %v655_v56 = vmul.u32 24, %v654_v8 }
  0xc0   : > { %v656_v58 = vsub.s32 %v635_v46, %v655_v56 }
  0xc2   : > { %vm671_vm15 = vcmp.ne.s32.totalorder %v656_v58, 0  ;;  %vm674_vm2 = vcmp.lt.s32.totalorder %v656_v58, 0  ;;  %v680_v63 = vadd.s32 24, %v656_v58 }
  0xc3   : > { %vm1720_vm4 = vmand %vm674_vm2, %vm671_vm15 }
  0xc4   : > { %v683_v9 = vsel %vm1720_vm4, %v680_v63, %v656_v58 }
  0xc5   : > { %vm686_vm10 = vcmp.lt.s32.totalorder %v683_v9, 16 }
  0xc6   : > { %v1733_v25 = vsel %vm686_vm10, 1.0, %v1553_v11 }
 0x178   : > { %v624_v2 = vpop.f32.mrf.mxu1 }
 0x179   : > { %v625_v6 = vadd.f32 %v624_v2, %v389_v5 }
 0x17a   : > { %v626_v10 = vpop.f32.mrf.mxu1 }
 0x17b   : > { %v632_v14 = vmax.f32 %v625_v6, 0.0 }
 0x17c   : > { %v583_v15 = vpop.f32.mrf.mxu0  ;;  %v627_v18 = vpop.f32.mrf.mxu1 }
 0x17d   : > { %v584_v17 = vadd.f32 %v583_v15, %v389_v5  ;;  %v698_v19 = vmul.f32 %v1728_v12, %v632_v14 }
 0x17e   : > { %v585_v20 = vpop.f32.mrf.mxu0  ;;  %v628_v23 = vpop.f32.mrf.mxu1 }
 0x17f   : > { %v630_v21 = vmax.f32 %v584_v17, 0.0  ;;  %v586_v22 = vadd.f32 %v585_v20, %v389_v5  ;;  %v701_v28 = vpack.c.bf16 %v698_v19, %v698_v19 }
 0x180   : > { %v587_v26 = vpop.f32.mrf.mxu0 }
 0x181   : > { %v631_v29 = vmax.f32 %v586_v22, 0.0  ;;  %v696_v31 = vmul.f32 %v1731_v24, %v630_v21  ;;  %v719_v33 = vrot.slane %v701_v28, %v711_v27 }
 0x182   : > { %v588_v30 = vpop.f32.mrf.mxu0 }
 0x183   : > { %v697_v32 = vmul.f32 %v1733_v25, %v631_v29 }
 0x185   : > { %v1435_v34 = vpack.c.bf16 %v697_v32, %v696_v31 }
 0x187   : > { %v712_v35 = vrot.slane %v1435_v34, %v711_v27 }
 0x189   : > { %v720_v36 = vcombine.low %v712_v35, %v719_v33 }
 0x18b   : > { %722 = vst [vmem:[#allocation2 + $0x2] sm:$0x3f] %v720_v36 }
 0x192   : > { %v929_v37 = vld [vmem:[#allocation2 + $0x2] sm:$0xff] }
 0x193   : > { %v847_v38 = vld [vmem:[#allocation2 + $0x2] sm:$0x3f]  ;;  %v938_v39 = vrot.slane %v929_v37, %v711_v27  ;;  %v931_v40 = vcombine.high %v929_v37, %v929_v37 }
 0x194   : > { %1436 = vst.sshfl [vmem:[#allocation3 + $0x60] sm:$0xf pattern:$0x76325410] %v847_v38  ;;  %v849_v41 = vcombine.high %v847_v38, %v847_v38  ;;  %v816_v43 = vld [vmem:[#allocation2] sm:$0xff] }
 0x195   : > { %946 = vrot.lane.b32.xlu1 %v938_v39, %s1548_s23  ;;  %915 = vrot.lane.b32.xlu0 %v938_v39, %s1554_s4  ;;  %v945_v42 = vrot.slane %v931_v40, %v711_v27  ;;  %v825_v44 = vrot.slane %v816_v43, %v711_v27  ;;  %v818_v45 = vcombine.high %v816_v43, %v816_v43 }
 0x196   : > { %1437 = vst.sshfl [vmem:[#allocation3 + $0x68] sm:$0x3 pattern:$0x76325410] %v849_v41 }
 0x197   : > { %v832_v46 = vrot.slane %v818_v45, %v711_v27 }
 0x199   : > { %948 = vrot.lane.b32.xlu1 %v945_v42, %s1548_s23  ;;  %885 = vrot.lane.b32.xlu0 %v938_v39, %s1550_s25 }
 0x19b   : > { %v1007_v37 = vld [vmem:[#allocation3 + $0x60] sm:$0xff] }
 0x19d   : > { %917 = vrot.lane.b32.xlu1 %v945_v42, %s1554_s4  ;;  %833 = vrot.lane.b32.xlu0 %v825_v44, %s1555_s5  ;;  %v1524_v45 = vld [vmem:[#allocation3 + $0x68] ss:$12 sps:$4 sm:$0xff]  }
 0x1a1   : > { %887 = vrot.lane.b32.xlu1 %v945_v42, %s1550_s25  ;;  %802 = vrot.lane.b32.xlu0 %v825_v44, %s1556_s6 }
 0x1a5   : > { %835 = vrot.lane.b32.xlu1 %v832_v46, %s1555_s5  ;;  %771 = vrot.lane.b32.xlu0 %v825_v44, %s1557_s7 }
 0x1a9   : > { %804 = vrot.lane.b32.xlu1 %v832_v46, %s1556_s6  ;;  %740 = vrot.lane.b32.xlu0 %v825_v44, %s1558_s8  ;;  %v1453_v44 = vcombine.high %v1007_v37, %v1543_v0 }
 0x1ad   : > { %773 = vrot.lane.b32.xlu1 %v832_v46, %s1557_s7  ;;  %976 = vrot.lane.b32.xlu0 %v938_v39, %s1547_s22 }
 0x1b1   : > { %742 = vrot.lane.b32.xlu1 %v832_v46, %s1558_s8 }
 0x1b5   : > { %978 = vrot.lane.b32.xlu1 %v945_v42, %s1547_s22 }
 0x207   : > { %v947_v49 = vpop.permute.xlu1 %946  ;;  %v916_v50 = vpop.permute.xlu0 %915 }
 0x208   : > { %v950_v53 = vrot.slane %v947_v49, 4  ;;  %v919_v59 = vrot.slane %v916_v50, 4 }
 0x20b   : > { %v949_v51 = vpop.permute.xlu1 %948  ;;  %v886_v52 = vpop.permute.xlu0 %885 }
 0x20c   : > { %v951_v8 = vrot.slane %v949_v51, 4  ;;  %v889_v3 = vrot.slane %v886_v52, 4 }
 0x20e   : > { %v952_v54 = vsel %vm241_vm1, %v950_v53, %v951_v8  ;;  %v954_v55 = vsel %vm271_vm6, %v949_v51, %v951_v8  ;;  %v1452_v53 = vcombine.low %v1007_v37, %v1543_v0 }
 0x20f   : > { %v953_v56 = vsel %vm271_vm6, %v947_v49, %v952_v54  ;;  %958 = vst [vmem:[#allocation3 + $0xb0] sm:$0x3] %v954_v55  ;;  %v918_v57 = vpop.permute.xlu1 %917  ;;  %v834_v58 = vpop.permute.xlu0 %833  ;;  %vm809_vm6 = vcmask 187392  }
 0x210   : > { %957 = vst [vmem:[#allocation3 + $0xa8] sm:$0x33] %v953_v56  ;;  %v920_v60 = vrot.slane %v918_v57, 4  ;;  %v837_v13 = vrot.slane %v834_v58, 4 }
 0x212   : > { %v921_v61 = vsel %vm241_vm1, %v919_v59, %v920_v60  ;;  %v924_v62 = vsel %vm922_vm11, %v918_v57, %v920_v60 }
 0x213   : > { %v923_v63 = vsel %vm922_vm11, %v916_v50, %v921_v61  ;;  %928 = vst [vmem:[#allocation3 + $0x98] sm:$0x3] %v924_v62  ;;  %v888_v1 = vpop.permute.xlu1 %887  ;;  %v803_v2 = vpop.permute.xlu0 %802 }
 0x214   : > { %927 = vst [vmem:[#allocation3 + $0x90] sm:$0x33] %v923_v63  ;;  %v890_v4 = vrot.slane %v888_v1, 4  ;;  %v806_v26 = vrot.slane %v803_v2, 4 }
 0x216   : > { %v891_v5 = vsel %vm241_vm1, %v889_v3, %v890_v4  ;;  %v893_v6 = vsel %vm243_vm8, %v888_v1, %v890_v4  ;;  %v1520_v7 = vld [vmem:[#allocation3 + $0xb0] ss:$12 sps:$4 sm:$0xff]  }
 0x217   : > { %v892_v9 = vsel %vm243_vm8, %v886_v52, %v891_v5  ;;  %897 = vst [vmem:[#allocation3 + $0x80] sm:$0x3] %v893_v6  ;;  %v836_v10 = vpop.permute.xlu1 %835  ;;  %v1019_v11 = vld [vmem:[#allocation3 + $0xa8] sm:$0xff]  ;;  %1226 = vmatpush1.bf16.msra.mxu1 %v1520_v7  ;;  %v772_v17 = vpop.permute.xlu0 %771  ;;  %vm778_vm8 = vcmask 195584  }
 0x218   : > { %896 = vst [vmem:[#allocation3 + $0x78] sm:$0x33] %v892_v9  ;;  %v838_v14 = vrot.slane %v836_v10, 4  ;;  %v1461_v15 = vcombine.low %v1019_v11, %v1543_v0  ;;  %v1462_v16 = vcombine.high %v1019_v11, %v1543_v0  ;;  %1227 = vmatprep.subr.bf16.mxu1 %v1543_v0  ;;  %v775_v38 = vrot.slane %v772_v17, 4 }
 0x21a   : > { %v839_v18 = vsel %vm241_vm1, %v837_v13, %v838_v14  ;;  %v842_v19 = vsel %vm840_vm0, %v836_v10, %v838_v14  ;;  %1184 = vmatprep.subr.bf16.mxu0 %v1462_v16  ;;  %v1521_v20 = vld [vmem:[#allocation3 + $0x98] ss:$12 sps:$4 sm:$0xff]   ;;  %v1532_v16 = vld [vmem:[#allocation3 + $0xc] sm:$0xff] }
 0x21b   : > { %v841_v21 = vsel %vm840_vm0, %v834_v58, %v839_v18  ;;  %846 = vst [vmem:[#allocation3 + $0x50] sm:$0x3] %v842_v19  ;;  %1185 = vmatpush1.bf16.msra.mxu0 %v1461_v15  ;;  %v805_v22 = vpop.permute.xlu1 %804  ;;  %v1015_v23 = vld [vmem:[#allocation3 + $0x90] sm:$0xff]  ;;  %1228 = vmatpush1.bf16.msra.mxu1 %v1521_v20  ;;  %v741_v34 = vpop.permute.xlu0 %740 }
 0x21c   : > { %845 = vst [vmem:[#allocation3 + $0x48] sm:$0x33] %v841_v21  ;;  %v807_v27 = vrot.slane %v805_v22, 4  ;;  %v1458_v28 = vcombine.low %v1015_v23, %v1543_v0  ;;  %v1459_v29 = vcombine.high %v1015_v23, %v1543_v0  ;;  %1229 = vmatprep.subr.bf16.mxu1 %v1543_v0  ;;  %v744_v50 = vrot.slane %v741_v34, 4 }
 0x21e   : > { %v808_v30 = vsel %vm241_vm1, %v806_v26, %v807_v27  ;;  %v811_v31 = vsel %vm809_vm6, %v805_v22, %v807_v27  ;;  %1186 = vmatprep.subr.bf16.mxu0 %v1459_v29  ;;  %v1522_v32 = vld [vmem:[#allocation3 + $0x80] ss:$12 sps:$4 sm:$0xff]  }
 0x21f   : > { %v810_v33 = vsel %vm809_vm6, %v803_v2, %v808_v30  ;;  %815 = vst [vmem:[#allocation3 + $0x38] sm:$0x3] %v811_v31  ;;  %1187 = vmatpush1.bf16.msra.mxu0 %v1458_v28  ;;  %v774_v35 = vpop.permute.xlu1 %773  ;;  %v1011_v36 = vld [vmem:[#allocation3 + $0x78] sm:$0xff]  ;;  %1230 = vmatpush1.bf16.msra.mxu1 %v1522_v32  ;;  %v977_v52 = vpop.permute.xlu0 %976 }
 0x220   : > { %814 = vst [vmem:[#allocation3 + $0x30] sm:$0x33] %v810_v33  ;;  %v776_v39 = vrot.slane %v774_v35, 4  ;;  %v1455_v40 = vcombine.low %v1011_v36, %v1543_v0  ;;  %v1456_v41 = vcombine.high %v1011_v36, %v1543_v0  ;;  %1231 = vmatprep.subr.bf16.mxu1 %v1543_v0  ;;  %v980_v60 = vrot.slane %v977_v52, 4 }
 0x222   : > { %v777_v42 = vsel %vm241_vm1, %v775_v38, %v776_v39  ;;  %v780_v43 = vsel %vm778_vm8, %v774_v35, %v776_v39  ;;  %1188 = vmatprep.subr.bf16.mxu0 %v1456_v41  ;;  %v1525_v56 = vld [vmem:[#allocation3 + $0x50] ss:$12 sps:$4 sm:$0xff]  }
 0x223   : > { %v779_v46 = vsel %vm778_vm8, %v772_v17, %v777_v42  ;;  %784 = vst [vmem:[#allocation3 + $0x20] sm:$0x3] %v780_v43  ;;  %1189 = vmatpush1.bf16.msra.mxu0 %v1455_v40  ;;  %v743_v48 = vpop.permute.xlu1 %742  ;;  %v1003_v49 = vld [vmem:[#allocation3 + $0x48] sm:$0xff]  ;;  %1232 = vmatpush1.bf16.msra.mxu1 %v1524_v45 }
 0x224   : > { %783 = vst [vmem:[#allocation3 + $0x18] sm:$0x33] %v779_v46  ;;  %v745_v51 = vrot.slane %v743_v48, 4  ;;  %1190 = vmatprep.subr.bf16.mxu0 %v1453_v44  ;;  %1233 = vmatprep.subr.bf16.mxu1 %v1543_v0  ;;  %v1450_v55 = vcombine.high %v1003_v49, %v1543_v0  ;;  %v1449_v62 = vcombine.low %v1003_v49, %v1543_v0 }
 0x226   : > { %v746_v8 = vsel %vm241_vm1, %v744_v50, %v745_v51  ;;  %v749_v54 = vsel %vm747_vm12, %v743_v48, %v745_v51  ;;  %v1526_v3 = vld [vmem:[#allocation3 + $0x38] ss:$12 sps:$4 sm:$0xff]  }
 0x227   : > { %v748_v57 = vsel %vm747_vm12, %v741_v34, %v746_v8  ;;  %753 = vst [vmem:[#allocation3 + $0x8] sm:$0x3] %v749_v54  ;;  %1191 = vmatpush1.bf16.msra.mxu0 %v1452_v53  ;;  %v979_v58 = vpop.permute.xlu1 %978  ;;  %v999_v59 = vld [vmem:[#allocation3 + $0x30] sm:$0xff]  ;;  %1234 = vmatpush1.bf16.msra.mxu1 %v1525_v56 }
 0x228   : > { %752 = vst [vmem:[#allocation3] sm:$0x33] %v748_v57  ;;  %v981_v61 = vrot.slane %v979_v58, 4  ;;  %1192 = vmatprep.subr.bf16.mxu0 %v1450_v55  ;;  %1235 = vmatprep.subr.bf16.mxu1 %v1543_v0  ;;  %v1447_v2 = vcombine.high %v999_v59, %v1543_v0  ;;  %v1446_v6 = vcombine.low %v999_v59, %v1543_v0 }
 0x22a   : > { %v982_v63 = vsel %vm241_vm1, %v980_v60, %v981_v61  ;;  %v984_v1 = vsel %vm285_vm5, %v979_v58, %v981_v61  ;;  %v1527_v9 = vld [vmem:[#allocation3 + $0x20] ss:$12 sps:$4 sm:$0xff]  }
 0x22b   : > { %v983_v4 = vsel %vm285_vm5, %v977_v52, %v982_v63  ;;  %988 = vst [vmem:[#allocation3 + $0xc8] sm:$0x3] %v984_v1  ;;  %1193 = vmatpush1.bf16.msra.mxu0 %v1449_v62  ;;  %v995_v5 = vld [vmem:[#allocation3 + $0x18] sm:$0xff]  ;;  %1236 = vmatpush1.bf16.msra.mxu1 %v1526_v3 }
 0x22c   : > { %987 = vst [vmem:[#allocation3 + $0xc0] sm:$0x33] %v983_v4  ;;  %1194 = vmatprep.subr.bf16.mxu0 %v1447_v2  ;;  %1237 = vmatprep.subr.bf16.mxu1 %v1543_v0  ;;  %v1444_v7 = vcombine.high %v995_v5, %v1543_v0  ;;  %v1443_v11 = vcombine.low %v995_v5, %v1543_v0  ;;  %v1533_v2 = vld [vmem:[%s1635_s18] sm:$0xff]  ;;  %v1534_v5 = vld [vmem:[%s1635_s18 + $0x8] sm:$0xff] }
 0x22e   : > { %v1528_v14 = vld [vmem:[#allocation3 + $0x8] ss:$12 sps:$4 sm:$0xff]  }
 0x22f   : > { %1195 = vmatpush1.bf16.msra.mxu0 %v1446_v6  ;;  %v991_v10 = vld [vmem:[#allocation3] sm:$0xff]  ;;  %1238 = vmatpush1.bf16.msra.mxu1 %v1527_v9 }
 0x230   : > { %1196 = vmatprep.subr.bf16.mxu0 %v1444_v7  ;;  %1239 = vmatprep.subr.bf16.mxu1 %v1543_v0  ;;  %v1441_v13 = vcombine.high %v991_v10, %v1543_v0  ;;  %v1440_v17 = vcombine.low %v991_v10, %v1532_v16 }
 0x232   : > { %v1529_v19 = vld [vmem:[#allocation3 + $0xc8] ss:$12 sps:$4 sm:$0xff]  }
 0x233   : > { %1197 = vmatpush1.bf16.msra.mxu0 %v1443_v11  ;;  %v1023_v15 = vld [vmem:[#allocation3 + $0xc0] sm:$0xff]  ;;  %1240 = vmatpush1.bf16.msra.mxu1 %v1528_v14 }
 0x234   : > { %1198 = vmatprep.subr.bf16.mxu0 %v1441_v13  ;;  %1255 = vmatprep.subr.bf16.mxu1 %v1532_v16  ;;  %v1465_v18 = vcombine.high %v1023_v15, %v1532_v16  ;;  %v1464_v20 = vcombine.low %v1023_v15, %v1532_v16 }
 0x237   : > { %1199 = vmatpush1.bf16.msra.mxu0 %v1440_v17  ;;  %1256 = vmatpush2.bf16.msra.mxu1 %v1529_v19 }
 0x238   : > { %1214 = vmatprep.subr.bf16.mxu0 %v1465_v18 }
 0x23a   : > { %1258 = vmatmul.mubr.bf16.vlgmr.msra.gmra.mxu1 %v1748_v47 }
 0x23b   : > { %1215 = vmatpush2.bf16.msra.mxu0 %v1464_v20 }
 0x23e   : > { %1217 = vmatmul.mubr.bf16.vlgmr.msra.gmra.mxu0 %v1748_v47 }
 0x2fa   : > { %v1259_v0 = vpop.f32.mrf.mxu1 }
 0x2fb   : > { %v1267_v22 = vmul.f32 %v1728_v12, %v1259_v0 }
 0x2fc   : > { %v1261_v21 = vpop.f32.mrf.mxu1 }
 0x2fd   : > { %v1278_v32 = vmul.f32 %v1267_v22, %v1259_v0  ;;  %v1272_v36 = vsel %vm241_vm1, %v1267_v22, 0.0 }
 0x2fe   : > { %v1218_v23 = vpop.f32.mrf.mxu0  ;;  %v1262_v27 = vpop.f32.mrf.mxu1 }
 0x2ff   : > { %v1265_v26 = vmul.f32 %v1731_v24, %v1218_v23 }
 0x300   : > { %v1220_v28 = vpop.f32.mrf.mxu0  ;;  %v1263_v31 = vpop.f32.mrf.mxu1 }
 0x301   : > { %v1276_v29 = vmul.f32 %v1265_v26, %v1218_v23  ;;  %v1266_v30 = vmul.f32 %v1733_v25, %v1220_v28  ;;  %v1269_v35 = vsel %vm241_vm1, %v1265_v26, 0.0  ;;  %v1282_v25 = vsel %vm241_vm1, %v1278_v32, 0.0 }
 0x302   : > { %v1222_v33 = vpop.f32.mrf.mxu0 }
 0x303   : > { %v1277_v34 = vmul.f32 %v1266_v30, %v1220_v28  ;;  %v1270_v47 = vsel %vm241_vm1, %v1266_v30, 0.0  ;;  %v1279_v38 = vsel %vm241_vm1, %v1276_v29, 0.0 }
 0x304   : > { %v1223_v37 = vpop.f32.mrf.mxu0  ;;  %v1271_v12 = vadd.f32 %v1270_v47, %v1269_v35 }
 0x305   : > { %v1280_v24 = vsel %vm241_vm1, %v1277_v34, 0.0 }
 0x306   : > { %v1273_v39 = vadd.f32 %v1272_v36, %v1271_v12  ;;  %v1281_v40 = vadd.f32 %v1280_v24, %v1279_v38 }
 0x308   : > { %1274 = vadd.xlane.f32.xlu0 %v1273_v39  ;;  %v1283_v41 = vadd.f32 %v1282_v25, %v1281_v40 }
 0x30a   : > { %1284 = vadd.xlane.f32.xlu1 %v1283_v41 }
 0x391   : > { %v1275_v42 = vpop.xlane.xlu0 %1274 }
 0x392   : > { %v1286_v43 = vmul.f32 0.00390625, %v1275_v42 }
 0x393   : > { %v1285_v44 = vpop.xlane.xlu1 %1284 }
 0x394   : > { %v1288_v45 = vmul.f32 %v1286_v43, %v1286_v43  ;;  %v1287_v46 = vmul.f32 0.00390625, %v1285_v44  ;;  %v1292_v50 = vsub.f32 0.0, %v1286_v43 }
 0x396   : > { %v1289_v48 = vsub.f32 %v1287_v46, %v1288_v45 }
 0x398   : > { %v1290_v49 = vadd.f32 1e-05, %v1289_v48 }
 0x39a   : > { %1530 = vrsqrt.f32 %v1290_v49 }
 0x3a7   : > { %v1531_v51 = vpop.eup %1530 }
 0x3a8   : > { %v1293_v52 = vmul.f32 %v1531_v51, %v1292_v50  ;;  %v1296_v53 = vmul.f32 %v1531_v51, %v1259_v0  ;;  %v1294_v8 = vmul.f32 %v1531_v51, %v1218_v23  ;;  %v1295_v54 = vmul.f32 %v1531_v51, %v1220_v28 }
 0x3aa   : > { %v1299_v55 = vadd.f32 %v1296_v53, %v1293_v52  ;;  %v1297_v56 = vadd.f32 %v1294_v8, %v1293_v52  ;;  %v1298_v57 = vadd.f32 %v1295_v54, %v1293_v52 }
 0x3ac   : > { %1306 = vrot.lane.b32.xlu1 %v1299_v55, %s1558_s8  ;;  %v1303_v58 = vcombine.low %v1297_v56, %v1298_v57 }
 0x3ae   : > { %1304 = vrot.lane.b32.xlu0 %v1303_v58, %s1558_s8 }
 0x41e   : > { %v1307_v59 = vpop.permute.xlu1 %1306 }
 0x41f   : > { %v1309_v61 = vrot.slane %v1307_v59, 4 }
 0x420   : > { %v1305_v60 = vpop.permute.xlu0 %1304 }
 0x421   : > { %v1308_v62 = vrot.slane %v1305_v60, 4 }
 0x423   : > { %v1311_v63 = vsel %vm747_vm12, %v1308_v62, %v1305_v60  ;;  %v1312_v1 = vsel %vm241_vm1, %v1308_v62, %v1309_v61 }
 0x424   : > { %v1316_v3 = vadd.f32 %v1533_v2, %v1311_v63  ;;  %v1313_v4 = vsel %vm747_vm12, %v1312_v1, %v1307_v59 }
 0x425   : > { %v1317_v6 = vadd.f32 %v1534_v5, %v1313_v4 }
 0x426   : > { %v1318_v7 = vmax.f32 %v1316_v3, 0.0 }
 0x427   : > { %v1319_v9 = vmax.f32 %v1317_v6, 0.0 }
 0x428   : > { %1322 = vrot.lane.b32.xlu0 %v1318_v7, %s1547_s22 }
 0x429   : > { %1324 = vrot.lane.b32.xlu1 %v1319_v9, %s1547_s22 }
 0x49a   : > { %v1323_v10 = vpop.permute.xlu0 %1322 }
 0x49b   : > { %v1326_v11 = vrot.slane %v1323_v10, 4  ;;  %v1325_v13 = vpop.permute.xlu1 %1324 }
 0x49c   : > { %v1327_v14 = vrot.slane %v1325_v13, 4 }
 0x49e   : > { %v1328_v15 = vsel %vm241_vm1, %v1326_v11, %v1327_v14  ;;  %v1331_v16 = vsel %vm285_vm5, %v1325_v13, %v1327_v14 }
 0x49f   : > { %v1330_v17 = vsel %vm285_vm5, %v1323_v10, %v1328_v15  ;;  %1335 = vst [vmem:[%s170_s16 + $0x8] sm:$0xf] %v1331_v16 }
 0x4a0   : > { %1334 = vst [vmem:[%s170_s16] sm:$0xff] %v1330_v17 }
 0x4a1 PF: > { %s13_s12 = sadd.s32 1, %s1541_s12  }
 0x4a2   : > { %p10_p4 = scmp.ge.s32.totalorder %s13_s12, 4  }
 0x4a4   :  { %12 = sbr.rel (!%p10_p4) target bundleno = 1 (0x1), region = 63 }

</bundles_post_ra>
